<compile_context>
chip_gen: v6e
topology: v6e:2x2x1
jax: 0.10.0
libtpu: 0.0.40
codegen_flags: <defaults>
</compile_context>

<pallas_src>
import functools

import jax
import jax.numpy as jnp
from jax.experimental import pallas as pl
from jax.experimental.pallas import tpu as pltpu


def _edge_tile_kernel(l_ref, r_ref, adj_ref, *, approx_sigmoid):
    # (TM, 1) + (1, TN) -> (TM, TN): sublane + lane broadcasts (VPU), then
    # sigmoid (EUP) and a lane-dense store.
    x = l_ref[...] + r_ref[...]
    if approx_sigmoid:
        # sigmoid(x) = 1 / (1 + exp(-x)); approx EUP reciprocal skips the
        # Newton-refinement VALU work so the store path stays the limiter.
        adj = pl.reciprocal(1.0 + jnp.exp(-x), approx=True)
    else:
        adj = jax.nn.sigmoid(x)
    adj_ref[...] = adj.astype(adj_ref.dtype)


def _round_up(x, m):
    return pl.cdiv(x, m) * m


@functools.partial(
    jax.jit, static_argnames=("tm", "tn", "out_dtype", "approx_sigmoid"))
def mlp_decoder(z1, z2, wl, wr, bl, br, *, tm=1024, tn=2048,
                out_dtype=jnp.bfloat16, approx_sigmoid=True):
    """Returns sigmoid(z1 @ wl + bl + (z2 @ wr + br).T), shape (N1, N2).

    z1: (N1, H), z2: (N2, H); wl/wr: (H, 1); bl/br: (1,) f32.
    out_dtype=jnp.float32, approx_sigmoid=False matches the PyTorch eval
    forward to f32 rounding; the defaults are the fast writeback path.
    """
    N1, H = z1.shape
    N2, H2 = z2.shape
    assert H == H2

    # --- Tiny O(N*H) projections, hoisted out of the tiled kernel. ---------
    l = z1.astype(jnp.float32) @ wl.astype(jnp.float32) + bl          # (N1, 1)
    r = (z2.astype(jnp.float32) @ wr.astype(jnp.float32) + br).T      # (1, N2)

    # --- Pad only to the (8, 128) layout minimum. --------------------------
    # Ragged last grid blocks are handled by Pallas (out-of-bounds output
    # writes are dropped), so padding waste stays negligible.
    n1p = _round_up(N1, 8)
    n2p = _round_up(N2, 128)
    l = jnp.pad(l, ((0, n1p - N1), (0, 0)))
    r = jnp.pad(r, ((0, 0), (0, n2p - N2)))

    tm_eff = min(tm, n1p)          # multiples of 8 / 128 by construction
    tn_eff = min(tn, n2p)

    # v7x has 2 TensorCores: make sure the parallel grid has >= 2 blocks when
    # the problem is big enough, so both cores get tiles (no-op on v5e/v6e).
    if pl.cdiv(n1p, tm_eff) * pl.cdiv(n2p, tn_eff) < 2:
        if n2p >= 2 * 128:
            tn_eff = _round_up(pl.cdiv(n2p, 2), 128)
        elif n1p >= 2 * 8:
            tm_eff = _round_up(pl.cdiv(n1p, 2), 8)

    grid = (pl.cdiv(n1p, tm_eff), pl.cdiv(n2p, tn_eff))

    # --- Explicit VMEM budget: double-buffered output tile + headroom. -----
    out_itemsize = jnp.dtype(out_dtype).itemsize
    tile_bytes = tm_eff * tn_eff * out_itemsize
    in_tile_bytes = (tm_eff + tn_eff) * 4
    vmem_limit = int(2 * (tile_bytes + in_tile_bytes)) + (2 << 20)

    cost = pl.CostEstimate(
        flops=2 * n1p * n2p,
        transcendentals=n1p * n2p,
        bytes_accessed=n1p * n2p * out_itemsize + (n1p + n2p) * 4,
    )

    adj = pl.pallas_call(
        functools.partial(_edge_tile_kernel, approx_sigmoid=approx_sigmoid),
        out_shape=jax.ShapeDtypeStruct((n1p, n2p), out_dtype),
        grid=grid,
        in_specs=[
            pl.BlockSpec((tm_eff, 1), lambda i, j: (i, 0)),
            pl.BlockSpec((1, tn_eff), lambda i, j: (0, j)),
        ],
        out_specs=pl.BlockSpec((tm_eff, tn_eff), lambda i, j: (i, j)),
        compiler_params=pltpu.CompilerParams(
            dimension_semantics=("parallel", "parallel"),
            vmem_limit_bytes=vmem_limit),
        cost_estimate=cost,
    )(l, r)

    return adj[:N1, :N2]


if __name__ == "__main__":
    hidden_dim = 32
    N1, N2 = 8, 16

    key = jax.random.PRNGKey(0)
    k_z1, k_z2, k_wl, k_wr, k_bl, k_br = jax.random.split(key, 6)

    z1 = jax.random.normal(k_z1, (N1, hidden_dim), dtype=jnp.float32)
    z2 = jax.random.normal(k_z2, (N2, hidden_dim), dtype=jnp.float32)

    # nn.Linear(hidden_dim, 1) init: U(-1/sqrt(H), 1/sqrt(H)) for weight & bias.
    bound = 1.0 / (hidden_dim ** 0.5)
    wl = jax.random.uniform(k_wl, (hidden_dim, 1), jnp.float32, -bound, bound)
    wr = jax.random.uniform(k_wr, (hidden_dim, 1), jnp.float32, -bound, bound)
    bl = jax.random.uniform(k_bl, (1,), jnp.float32, -bound, bound)
    br = jax.random.uniform(k_br, (1,), jnp.float32, -bound, bound)

    ref = jax.nn.sigmoid((z1 @ wl + bl) + (z2 @ wr + br).T)

    # Exact path (matches the PyTorch eval-mode forward): f32 + exact sigmoid.
    adj_exact = mlp_decoder(z1, z2, wl, wr, bl, br,
                            out_dtype=jnp.float32, approx_sigmoid=False)
    jax.block_until_ready(adj_exact)
    assert adj_exact.shape == (N1, N2)
    assert jnp.allclose(adj_exact, ref, atol=1e-5, rtol=1e-5)

    # Default fast path: bf16 writeback + approx-reciprocal sigmoid.
    adj_fast = mlp_decoder(z1, z2, wl, wr, bl, br)
    jax.block_until_ready(adj_fast)
    assert adj_fast.shape == (N1, N2)
    assert adj_fast.dtype == jnp.bfloat16
    assert jnp.allclose(adj_fast.astype(jnp.float32), ref, atol=2e-2)

    # Ragged multi-tile sanity check: exercises (8,128)-only padding, a cdiv
    # grid with a ragged last row-block, and the 2-D parallel grid.
    M1, M2 = 300, 200
    za = jax.random.normal(k_z1, (M1, hidden_dim), dtype=jnp.float32)
    zb = jax.random.normal(k_z2, (M2, hidden_dim), dtype=jnp.float32)
    ref2 = jax.nn.sigmoid((za @ wl + bl) + (zb @ wr + br).T)
    adj2 = mlp_decoder(za, zb, wl, wr, bl, br, tm=256, tn=128,
                       out_dtype=jnp.float32, approx_sigmoid=False)
    jax.block_until_ready(adj2)
    assert adj2.shape == (M1, M2)
    assert jnp.allclose(adj2, ref2, atol=1e-5, rtol=1e-5)

    print("KERNEL_OK")
</pallas_src>

<mosaic_0001>
module attributes {stable_mosaic.version = 11 : i64} {
  func.func @_edge_tile_kernel(%arg0: i32, %arg1: i32, %arg2: memref<8x1xf32, #tpu.memory_space<vmem>>, %arg3: memref<1x128xf32, #tpu.memory_space<vmem>>, %arg4: memref<8x128xf32, #tpu.memory_space<vmem>>) attributes {dimension_semantics = [#tpu.dimension_semantics<parallel>, #tpu.dimension_semantics<parallel>], iteration_bounds = array<i64: 1, 1>, scalar_prefetch = 0 : i64, scratch_operands = 0 : i64, tpu.core_type = #tpu.core_type<tc>, window_params = [{transform_indices = @transform_0, window_bounds = array<i64: 8, 1>}, {transform_indices = @transform_1, window_bounds = array<i64: 1, 128>}, {transform_indices = @transform_2, window_bounds = array<i64: 8, 128>}]} {
    %c0 = arith.constant 0 : index
    %c0_0 = arith.constant 0 : index
    %0 = vector.load %arg2[%c0, %c0_0] : memref<8x1xf32, #tpu.memory_space<vmem>>, vector<8x1xf32>
    %c0_1 = arith.constant 0 : index
    %c0_2 = arith.constant 0 : index
    %1 = vector.load %arg3[%c0_1, %c0_2] : memref<1x128xf32, #tpu.memory_space<vmem>>, vector<1x128xf32>
    %2 = vector.broadcast %0 : vector<8x1xf32> to vector<8x128xf32>
    %3 = vector.broadcast %1 : vector<1x128xf32> to vector<8x128xf32>
    %4 = arith.addf %2, %3 : vector<8x128xf32>
    %5 = arith.negf %4 : vector<8x128xf32>
    %6 = math.exp %5 : vector<8x128xf32>
    %cst = arith.constant 1.000000e+00 : f32
    %7 = vector.broadcast %cst : f32 to vector<8x128xf32>
    %8 = arith.addf %7, %6 : vector<8x128xf32>
    %9 = arith.divf %7, %8 : vector<8x128xf32>
    %c0_3 = arith.constant 0 : index
    %c0_4 = arith.constant 0 : index
    %10 = vector.load %arg4[%c0_3, %c0_4] : memref<8x128xf32, #tpu.memory_space<vmem>>, vector<8x128xf32>
    tpu.vector_store %arg4[%c0_3, %c0_4], %9 {strides = array<i32>} : memref<8x128xf32, #tpu.memory_space<vmem>>, vector<8x128xf32>,
    return
  }
  func.func @transform_0(%arg0: i32, %arg1: i32) -> (i32, i32) {
    %c0_i32 = arith.constant 0 : i32
    %c0_i32_0 = arith.constant 0 : i32
    return %arg0, %c0_i32 : i32, i32
  }
  func.func @transform_1(%arg0: i32, %arg1: i32) -> (i32, i32) {
    %c0_i32 = arith.constant 0 : i32
    %c0_i32_0 = arith.constant 0 : i32
    return %c0_i32, %arg1 : i32, i32
  }
  func.func @transform_2(%arg0: i32, %arg1: i32) -> (i32, i32) {
    %c0_i32 = arith.constant 0 : i32
    return %arg0, %arg1 : i32, i32
  }
}

</mosaic_0001>

<bundles_post_ra>
// kernel: mlp_decoder.1
= control target key start
LH: loop header
LB: loop body
LE: loop exit
PB: predicated region body
PF: predicated region fallthrough
CT: control target
= control target key end

     0   :  { %s104_s0 = inlined_call_operand.vmem [shape: f32[8,1], index: 0, kind: input, shape index: {}]   ;;  %s105_s1 = inlined_call_operand.vmem [shape: f32[1,128], index: 1, kind: input, shape index: {}]   ;;  %s106_s2 = inlined_call_operand.hbm [shape: f32[8,128], index: 2, kind: output, shape index: {}]  }
   0x1   :  { %v12_v0 = vld [vmem:[%s104_s0] sm:$0xff] }
   0x2   :  { %7 = vsyncpa [#allocation3], 0  ;;  %v78_v1 = vmov 0   ;;  %v47_v2 = vld [vmem:[%s105_s1] ss:$0 sm:$0xff]  ;;  %s79_s13 = smov [#allocation2]  }
   0x3   :  { %51 = vset.pattern.permute.xlu0 %v78_v1  ;;  %s39_s14 = sshll.u32 %s79_s13, 4  ;;  %s40_s14 = int_to_ptr.vmem [resolvable:$true] %s39_s14 }
   0x4   :  { %16 = vperm.xlu0 %51, %v12_v0   ;;  %s56_s0 = scalar_lea.vmem %s40_s14, 128  ;;  %p61_p1 = scmp.lt.s32.totalorder %s40_s14, %s40_s14 }
   0x5   :  { %p57_p0 = scmp.ne.s32.totalorder %s40_s14, %s56_s0  ;;  %p62_p2 = scmp.lt.s32.totalorder %s56_s0, %s56_s0 }
   0x7   :  { %p63_p3 = por %p62_p2, %p61_p1 }
   0x9   :  { %p64_p4 = pnand %p63_p3, %p57_p0 }
  0x7f   :  { %v17_v3 = vpop.permute.xlu0 %16 }
  0x80   :  { %v25_v4 = vadd.f32 %v47_v2, %v17_v3 }
  0x82   :  { %v48_v5 = vmul.f32 -1.442695, %v25_v4 }
  0x84   :  { %52 = vpow2.f32 %v48_v5 }
  0x91   :  { %v53_v6 = vpop.eup %52 }
  0x92   :  { %v29_v7 = vadd.f32 1.0, %v53_v6 }
  0x94   :  { %54 = vrcp.f32 %v29_v7 }
  0xa1   :  { %v55_v8 = vpop.eup %54 }
  0xa2   :  { %32 = vst [vmem:[#allocation2] sm:$0xff] %v55_v8 }
  0xa3   :  { %67 = shalt.err (!%p64_p4)
}
  0xa4   :  { %42 = dma.vmem_to_hbm [thread:$0]  %s40_s14, 128, %s106_s2, [#allocation3]  }
  0xa5   :  { %76 = dma.done.wait [#allocation3], 128  }
  0xa6   :  { %77 = vsyncadd [#allocation3], 4294967168 }
  0xa7   :  { %46 = vsyncpa [#allocation3], 1 }

</bundles_post_ra>
